<compile_context>
chip_gen: v7x
topology: tpu7x:2x2x1
jax: 0.10.0
libtpu: 0.0.40
codegen_flags: <defaults>
</compile_context>

<pallas_src>
import functools
import math

import jax
import jax.numpy as jnp
from jax import lax
from jax.experimental import pallas as pl
from jax.experimental.pallas import tpu as pltpu


# ---------------------------------------------------------------------------
# pltpu.roll convention probe (run once, eagerly): +1 if pltpu.roll matches
# jnp.roll semantics (out[i] = in[i - shift]), -1 otherwise.
# ---------------------------------------------------------------------------
_ROLL_SIGN = None


def _roll_sign():
    global _ROLL_SIGN
    if _ROLL_SIGN is None:
        def probe(x_ref, o_ref):
            o_ref[...] = pltpu.roll(x_ref[...], shift=1, axis=1)

        x = lax.broadcasted_iota(jnp.float32, (8, 128), 1)
        y = pl.pallas_call(
            probe, out_shape=jax.ShapeDtypeStruct((8, 128), jnp.float32))(x)
        _ROLL_SIGN = 1 if int(y[0, 0]) == 127 else -1
    return _ROLL_SIGN


# ---------------------------------------------------------------------------
# Kernel
# ---------------------------------------------------------------------------
def _lpu_kernel(x_ref, w_ref, b_ref, g_ref, beta_ref, seg_ref, o_ref,
                *, C: int, roll_sign: int, eps: float = 1e-5):
    """Fused depthwise 3x3 conv + LayerNorm on one (Bblk, H, W*C) block.

    x_ref   : (Bblk, H, W*C)  input block (lane-dense, channels folded into W)
    w_ref   : (9, W*C)        conv taps, lane-tiled; wrap-around lanes zeroed
    b_ref   : (1, W*C)        conv bias (lane tiled)
    g_ref   : (1, W*C)        LayerNorm gamma (lane tiled)
    beta_ref: (1, W*C)        LayerNorm beta (lane tiled)
    seg_ref : (W*C, W*C)      block-diagonal 0/1 per-pixel segment-sum matrix
    o_ref   : (Bblk, H, W*C)  output block
    """
    bblk, H, WC = o_ref.shape
    f32 = jnp.float32
    inv_c = 1.0 / float(C)

    def rollb(v, k, axis):
        # out[i] = v[i - k]  (circular), independent of roll convention.
        n = v.shape[axis]
        k = k % n
        s = k if roll_sign == 1 else (n - k) % n
        return pltpu.roll(v, shift=s, axis=axis)

    x = x_ref[...].astype(f32)          # (Bblk, H, WC)
    w = w_ref[...].astype(f32)          # (9, WC)

    # Horizontal (lane) halo, hoisted out of the kernel-row loop: 2 rolls.
    xl = rollb(x, C, axis=2)            # pixel w-1 values at pixel w's lanes
    xr = rollb(x, WC - C, axis=2)       # pixel w+1 values at pixel w's lanes

    # Per-kernel-row contributions on the VPU.  Weights are row-invariant so
    # they commute with the vertical roll; the zeroed wrap lanes in w_ref
    # already kill the horizontal out-of-image taps.
    def row_contrib(kh):
        return (xl * w[3 * kh + 0:3 * kh + 1]
                + x * w[3 * kh + 1:3 * kh + 2]
                + xr * w[3 * kh + 2:3 * kh + 3])

    t0 = row_contrib(0)                 # needs source row h-1
    t1 = row_contrib(1)
    t2 = row_contrib(2)                 # needs source row h+1

    # Vertical halo: 2 rolls + per-image top/bottom row masks.
    hidx = lax.broadcasted_iota(jnp.int32, (H, WC), 0)
    acc = (t1
           + jnp.where(hidx > 0, rollb(t0, 1, axis=1), 0.0)
           + jnp.where(hidx < H - 1, rollb(t2, H - 1, axis=1), 0.0)
           + b_ref[...].astype(f32))

    # LayerNorm over each C-lane group (= one pixel) via a single
    # block-diagonal 0/1 segment-sum matrix: lane-dense MXU output (N = WC),
    # 1/C applied on the VPU, centered variance to avoid cancellation.
    acc2 = acc.reshape(bblk * H, WC)
    seg = seg_ref[...]
    mean = jnp.dot(acc2, seg, preferred_element_type=f32) * inv_c
    d = acc2 - mean
    var = jnp.dot(d * d, seg, preferred_element_type=f32) * inv_c
    y = d * lax.rsqrt(var + eps)
    out = y * g_ref[...].astype(f32) + beta_ref[...].astype(f32)
    o_ref[...] = out.reshape(bblk, H, WC).astype(o_ref.dtype)


# ---------------------------------------------------------------------------
# Parameter packing (tiny, done once in plain JAX)
# ---------------------------------------------------------------------------
def _pack_lpu_params(conv_w, conv_b, ln_g, ln_b, W):
    C = conv_b.shape[0]
    WC = W * C

    # Tile per-channel quantities across the W pixels folded into the lanes.
    w9 = conv_w.reshape(9, C).astype(jnp.float32)                 # k = 3*kh+kw
    w_tiled = jnp.tile(w9[:, None, :], (1, W, 1)).reshape(9, WC)

    lane = jnp.arange(WC)
    left_ok = lane >= C                 # valid lanes for dw = -1 taps (w >= 1)
    right_ok = lane < (W - 1) * C       # valid lanes for dw = +1 taps (w <= W-2)
    kw_idx = jnp.arange(9) % 3
    valid = jnp.where(kw_idx[:, None] == 0, left_ok[None, :],
                      jnp.where(kw_idx[:, None] == 2, right_ok[None, :], True))
    w_packed = jnp.where(valid, w_tiled, 0.0).astype(jnp.float32)

    b_t = jnp.tile(conv_b.astype(jnp.float32), W).reshape(1, WC)
    g_t = jnp.tile(ln_g.astype(jnp.float32), W).reshape(1, WC)
    beta_t = jnp.tile(ln_b.astype(jnp.float32), W).reshape(1, WC)

    # Block-diagonal 0/1 segment-sum matrix (exact in any matmul precision);
    # the 1/C scale is applied inside the kernel on the VPU.
    # Note: grows as WC^2 — fine for WC <= ~1024; for larger WC fall back to
    # the factored (WC, W)/(W, WC) pair.
    seg_id = jnp.arange(WC) // C
    seg_mat = (seg_id[:, None] == seg_id[None, :]).astype(jnp.float32)
    return w_packed, b_t, g_t, beta_t, seg_mat


# ---------------------------------------------------------------------------
# Forward wrapper
# ---------------------------------------------------------------------------
def lpu_forward(x, conv_w, conv_b, ln_g, ln_b, *, block_batch=None):
    """x: (B, N, C); conv_w: (3, 3, C); conv_b/ln_g/ln_b: (C,)."""
    B, N, C = x.shape
    H = W = int(math.isqrt(N))
    assert H * W == N, "sequence length must be a perfect square"
    WC = W * C
    # Lane-dense premise: ideally W*C % 128 == 0 (true here: 8*32=256).  If a
    # production shape violates this the kernel is still correct, just with
    # masked partial stores.

    # Lane-dense view (contiguous, free reshape): (B, N, C) -> (B, H, W*C).
    x_wc = x.reshape(B, H, WC)
    w_packed, b_t, g_t, beta_t, seg_mat = _pack_lpu_params(
        conv_w, conv_b, ln_g, ln_b, W)

    # Block-batch heuristic: target ~2 MiB of f32 per grid step (amortize the
    # ~0.35 us per-step overhead).  Prefer >= 2 grid steps when B >= 2 so both
    # v7x TensorCores get work, but never shrink a block below ~1 MiB for it.
    per_batch_f32 = H * WC * 4
    if block_batch is None:
        target_bytes = 2 << 20
        min_bytes = 1 << 20
        block_batch = max(1, min(B, target_bytes // max(1, per_batch_f32)))
        if B >= 2:
            half = max(1, B // 2)
            if block_batch > half and half * per_batch_f32 >= min_bytes:
                block_batch = half
    block_batch = max(1, min(int(block_batch), B))
    while B % block_batch:
        block_batch -= 1
    grid = (B // block_batch,)

    # Explicit VMEM budget: double-buffered in/out blocks + f32 intermediates
    # (x, xl, xr, t0..t2, acc, stats) + params, with headroom.  Clamped to
    # [32 MiB, 64 MiB] — raises v5e's 16 MiB default, fits v7x's 64 MiB/TC.
    itemsize = jnp.dtype(x.dtype).itemsize
    block_io = block_batch * H * WC * itemsize
    block_f32 = block_batch * per_batch_f32
    param_bytes = (9 + 3) * WC * 4 + WC * WC * 4
    vmem_need = 4 * block_io + 8 * block_f32 + 2 * param_bytes + (2 << 20)
    vmem_limit = int(min(64 << 20, max(32 << 20, vmem_need)))

    kernel = functools.partial(_lpu_kernel, C=C, roll_sign=_roll_sign())

    out = pl.pallas_call(
        kernel,
        out_shape=jax.ShapeDtypeStruct((B, H, WC), x.dtype),
        grid_spec=pltpu.PrefetchScalarGridSpec(
            num_scalar_prefetch=0,
            grid=grid,
            in_specs=[
                pl.BlockSpec((block_batch, H, WC), lambda i: (i, 0, 0)),
                pl.BlockSpec((9, WC), lambda i: (0, 0)),
                pl.BlockSpec((1, WC), lambda i: (0, 0)),
                pl.BlockSpec((1, WC), lambda i: (0, 0)),
                pl.BlockSpec((1, WC), lambda i: (0, 0)),
                pl.BlockSpec((WC, WC), lambda i: (0, 0)),
            ],
            out_specs=pl.BlockSpec((block_batch, H, WC), lambda i: (i, 0, 0)),
        ),
        compiler_params=pltpu.CompilerParams(
            dimension_semantics=("parallel",),
            vmem_limit_bytes=vmem_limit),
    )(x_wc, w_packed, b_t, g_t, beta_t, seg_mat)

    return out.reshape(B, N, C)


# ---------------------------------------------------------------------------
# Pure-JAX reference
# ---------------------------------------------------------------------------
def lpu_reference(x, conv_w, conv_b, ln_g, ln_b):
    B, N, C = x.shape
    H = W = int(math.isqrt(N))
    x_nhwc = x.reshape(B, H, W, C)
    rhs = conv_w.reshape(3, 3, 1, C)    # HWIO, feature_group_count=C
    y = lax.conv_general_dilated(
        x_nhwc, rhs, window_strides=(1, 1), padding="SAME",
        dimension_numbers=("NHWC", "HWIO", "NHWC"),
        feature_group_count=C)
    y = y + conv_b.reshape(1, 1, 1, C)
    y = y.reshape(B, N, C)
    mean = jnp.mean(y, axis=-1, keepdims=True)
    var = jnp.mean(jnp.square(y - mean), axis=-1, keepdims=True)
    return (y - mean) * lax.rsqrt(var + 1e-5) * ln_g + ln_b


if __name__ == "__main__":
    key = jax.random.PRNGKey(0)
    B, C = 2, 32          # dim = 32
    H = W = 8
    N = H * W             # seq length = 64

    kx, kw, kb, kg, kbeta = jax.random.split(key, 5)
    x = jax.random.normal(kx, (B, N, C), dtype=jnp.float32)

    # Conv2d-like init: fan_in = 1 * 3 * 3 = 9 for a depthwise conv.
    bound = 1.0 / math.sqrt(9.0)
    conv_w = jax.random.uniform(kw, (3, 3, C), jnp.float32, -bound, bound)
    conv_b = jax.random.uniform(kb, (C,), jnp.float32, -bound, bound)
    ln_g = 1.0 + 0.1 * jax.random.normal(kg, (C,), jnp.float32)
    ln_b = 0.1 * jax.random.normal(kbeta, (C,), jnp.float32)

    out = jax.block_until_ready(lpu_forward(x, conv_w, conv_b, ln_g, ln_b))
    ref = jax.block_until_ready(lpu_reference(x, conv_w, conv_b, ln_g, ln_b))

    assert out.shape == (B, N, C)
    err = float(jnp.max(jnp.abs(out - ref)))
    assert err < 1e-3, f"max abs error vs reference: {err}"
    print("KERNEL_OK")
</pallas_src>

<mosaic_0001>
module attributes {stable_mosaic.version = 11 : i64} {
  func.func @probe(%arg0: memref<8x128xf32, #tpu.memory_space<vmem>>, %arg1: memref<8x128xf32, #tpu.memory_space<vmem>>) attributes {dimension_semantics = [], scalar_prefetch = 0 : i64, scratch_operands = 0 : i64, tpu.core_type = #tpu.core_type<tc>} {
    %c0 = arith.constant 0 : index
    %c0_0 = arith.constant 0 : index
    %0 = vector.load %arg0[%c0, %c0_0] : memref<8x128xf32, #tpu.memory_space<vmem>>, vector<8x128xf32>
    %c1_i32 = arith.constant 1 : i32
    %1 = tpu.dynamic_rotate %0 by %c1_i32 dim 1 : vector<8x128xf32>, i32 -> vector<8x128xf32>
    %c0_1 = arith.constant 0 : index
    %c0_2 = arith.constant 0 : index
    %2 = vector.load %arg1[%c0_1, %c0_2] : memref<8x128xf32, #tpu.memory_space<vmem>>, vector<8x128xf32>
    tpu.vector_store %arg1[%c0_1, %c0_2], %1 {strides = array<i32>} : memref<8x128xf32, #tpu.memory_space<vmem>>, vector<8x128xf32>,
    return
  }
}

</mosaic_0001>

<bundles_post_ra>
// kernel: tpu_custom_call.1
= control target key start
LH: loop header
LB: loop body
LE: loop exit
PB: predicated region body
PF: predicated region fallthrough
CT: control target
= control target key end

     0   :  { %6 = vsyncpa [#allocation3], 0  ;;  %s128_s0 = inlined_call_operand.hbm [shape: f32[8,128], index: 0, kind: input, shape index: {}]   ;;  %s129_s1 = inlined_call_operand.hbm [shape: f32[8,128], index: 1, kind: output, shape index: {}]  }
   0x1   :  { %7 = vsyncpa [#allocation4], 0  ;;  %s91_s6 = smov [#allocation2]   ;;  %s43_s10 = scalar_lea.hbm %s128_s0, 128 }
   0x2   :  { %s14_s7 = sshll.u32 %s91_s6, 4  ;;  %p44_p0 = scmp.ne.s32.totalorder %s128_s0, %s43_s10  ;;  %s15_s7 = int_to_ptr.vmem [resolvable:$true] %s14_s7 }
   0x3   :  { %p47_p1 = scmp.lt.u32.totalorder %s43_s10, %s128_s0 }
   0x5   :  { %p49_p2 = pnand %p47_p1, %p44_p0 }
   0x7   :  { %52 = shalt.err (!%p49_p2)
}
   0x8   :  { %s53_s15 = scalar_lea.vmem %s15_s7, 128  ;;  %p58_p4 = scmp.lt.s32.totalorder %s15_s7, %s15_s7 }
   0x9   :  { %p54_p3 = scmp.ne.s32.totalorder %s15_s7, %s53_s15  ;;  %p59_p5 = scmp.lt.s32.totalorder %s53_s15, %s53_s15 }
   0xb   :  { %p60_p6 = por %p59_p5, %p58_p4 }
   0xd   :  { %p61_p7 = pnand %p60_p6, %p54_p3 }
   0xf   :  { %64 = shalt.err (!%p61_p7)
}
  0x10   :  { %17 = dma.hbm_to_vmem [thread:$0]  %s128_s0, 128, %s15_s7, [#allocation3]  }
  0x11   :  { %87 = dma.done.wait [#allocation3], 128  }
  0x12   :  { %88 = vsyncadd [#allocation3], 4294967168  ;;  %v21_v0 = vld [vmem:[#allocation2] sm:$0xff]  ;;  %s92_s18 = smov 1   ;;  %s93_s19 = smov [#allocation5]  }
  0x13   :  { %22 = vrot.lane.b32.xlu0 %v21_v0, %s92_s18  ;;  %s31_s20 = sshll.u32 %s93_s19, 4  ;;  %s32_s20 = int_to_ptr.vmem [resolvable:$true] %s31_s20 }
  0x14   :  { %s65_s21 = scalar_lea.vmem %s32_s20, 128  ;;  %p70_p9 = scmp.lt.s32.totalorder %s32_s20, %s32_s20 }
  0x15   :  { %p66_p8 = scmp.ne.s32.totalorder %s32_s20, %s65_s21  ;;  %p71_p10 = scmp.lt.s32.totalorder %s65_s21, %s65_s21 }
  0x17   :  { %p72_p11 = por %p71_p10, %p70_p9 }
  0x19   :  { %p73_p12 = pnand %p72_p11, %p66_p8 }
  0x85   :  { %v23_v1 = vpop.permute.xlu0 %22 }
  0x86   :  { %24 = vst [vmem:[#allocation5] sm:$0xff] %v23_v1 }
  0x87   :  { %76 = shalt.err (!%p73_p12)
}
  0x88   :  { %s77_s0 = scalar_lea.hbm %s129_s1, 128 }
  0x89   :  { %p78_p13 = scmp.ne.s32.totalorder %s129_s1, %s77_s0  ;;  %p81_p0 = scmp.lt.u32.totalorder %s77_s0, %s129_s1 }
  0x8b   :  { %p83_p1 = pnand %p81_p0, %p78_p13 }
  0x8d   :  { %86 = shalt.err (!%p83_p1)
}
  0x8e   :  { %34 = dma.vmem_to_hbm [thread:$0]  %s32_s20, 128, %s129_s1, [#allocation4]  }
  0x8f   :  { %89 = dma.done.wait [#allocation4], 128  }
  0x90   :  { %90 = vsyncadd [#allocation4], 4294967168 }
  0x91   :  { %38 = vsyncpa [#allocation3], 1 }
  0x92   :  { %39 = vsyncpa [#allocation4], 1 }

</bundles_post_ra>
